<compile_context>
chip_gen: v7x
topology: tpu7x:2x2x1
jax: 0.10.0
libtpu: 0.0.40
codegen_flags: <defaults>
</compile_context>

<pallas_src>
import functools

import jax
import jax.numpy as jnp
from jax.experimental import pallas as pl
from jax.experimental.pallas import tpu as pltpu


def _round_up(x: int, m: int) -> int:
    return ((x + m - 1) // m) * m


def _vmem_limit_bytes(frac: float = 0.8, fallback: int = 64 * 1024 * 1024) -> int:
    """Generation-aware VMEM limit: leave compiler headroom on every gen."""
    try:
        cap = pltpu.get_tpu_info().vmem_capacity_bytes
    except Exception:  # pragma: no cover - info API unavailable
        return fallback
    return int(cap * frac)


def _pick_col_tile(dp: int, max_weight_bytes: int = 16 * 1024 * 1024) -> int:
    """Output-column tile so the bf16 weight block stays VMEM-bounded (v7x)."""
    if dp * dp * 2 <= max_weight_bytes:
        return dp                                   # fully resident weight
    for cand in (1024, 512, 256):
        if dp % cand == 0 and dp * cand * 2 <= max_weight_bytes:
            return cand
    return 128                                      # dp is a multiple of 128


def _layer_scale_kernel(x_ref, gamma_ref, beta_ref, wt_ref, b_ref, alpha_ref,
                        o_ref, y_ref, *, eps: float, d_actual: int, tn: int):
    j = pl.program_id(1)

    # ---- Phase 1 (once per row tile): LayerNorm -> bf16 scratch, reused
    #      across all output-column tiles j.  All stats in f32, one pass. ----
    @pl.when(j == 0)
    def _():
        x = x_ref[...].astype(jnp.float32)
        inv_d = jnp.float32(1.0 / d_actual)
        s1 = jnp.sum(x, axis=-1, keepdims=True)
        s2 = jnp.sum(x * x, axis=-1, keepdims=True)   # padded lanes are zero
        mean = s1 * inv_d
        var = s2 * inv_d - mean * mean
        y = (x - mean) * jax.lax.rsqrt(var + eps)
        # Padded lanes of gamma/beta are zero -> padded lanes of y become zero.
        y = y * gamma_ref[...].astype(jnp.float32) + beta_ref[...].astype(jnp.float32)
        y_ref[...] = y.astype(jnp.bfloat16)

    # ---- Phase 2 (every (i, j)): Linear column tile (bf16 MXU operands,
    #      f32 accumulation), LayerScale alpha, residual add in f32. ----
    z = jnp.dot(y_ref[...], wt_ref[...], preferred_element_type=jnp.float32)
    z = z + b_ref[...].astype(jnp.float32)
    col0 = pl.multiple_of(j * tn, tn)
    x_cols = x_ref[:, pl.ds(col0, tn)].astype(jnp.float32)
    out = x_cols + alpha_ref[...].astype(jnp.float32) * z
    o_ref[...] = out.astype(o_ref.dtype)


def layer_scale_forward(x, gamma, beta, weight, bias, alpha,
                        *, eps: float = 1e-5, tile_rows: int = 512):
    """x: (B, N, D). weight: (D, D) in PyTorch (out, in) convention."""
    B, N, D = x.shape
    rows = B * N
    dp = D if D % 128 == 0 else _round_up(D, 128)   # lane-dense feature width

    xf = x.reshape(rows, D)                          # free (contiguous) reshape
    if dp != D:
        # Only pay the padding pass when D is not already lane-dense.
        xf = jnp.pad(xf, ((0, 0), (0, dp - D)))

    def _pad_vec(v):
        v = v.astype(jnp.float32).reshape(1, D)
        if dp != D:
            v = jnp.pad(v, ((0, 0), (0, dp - D)))
        return v

    gamma2 = _pad_vec(gamma)
    beta2 = _pad_vec(beta)
    bias2 = _pad_vec(bias)
    alpha2 = _pad_vec(alpha)

    # Cast before transposing so the transpose moves bf16, not f32.  For static
    # weights this prep should be precomputed once outside the forward path.
    wt = weight.astype(jnp.bfloat16).T               # (in, out) bf16 MXU operand
    if dp != D:
        wt = jnp.pad(wt, ((0, dp - D), (0, dp - D)))

    # MXU-friendly row tile; shrink for tiny inputs (still a multiple of 8).
    tr = min(tile_rows, _round_up(rows, 8))
    grid_i = pl.cdiv(rows, tr)        # ragged last block: OOB writes are dropped
    tn = _pick_col_tile(dp)
    grid_j = dp // tn
    resident = grid_j == 1            # weight/bias/alpha grid-invariant?

    kernel = functools.partial(_layer_scale_kernel, eps=eps, d_actual=D, tn=tn)

    def _build(single_buffer):
        mode = pl.Buffered(1) if single_buffer else None
        return pl.pallas_call(
            kernel,
            out_shape=jax.ShapeDtypeStruct((rows, dp), x.dtype),
            grid=(grid_i, grid_j),
            in_specs=[
                pl.BlockSpec((tr, dp), lambda i, j: (i, 0)),          # x rows
                pl.BlockSpec((1, dp), lambda i, j: (0, 0),
                             pipeline_mode=mode),                     # LN gamma
                pl.BlockSpec((1, dp), lambda i, j: (0, 0),
                             pipeline_mode=mode),                     # LN beta
                pl.BlockSpec((dp, tn), lambda i, j: (0, j),
                             pipeline_mode=mode if resident else None),  # W^T
                pl.BlockSpec((1, tn), lambda i, j: (0, j),
                             pipeline_mode=mode if resident else None),  # bias
                pl.BlockSpec((1, tn), lambda i, j: (0, j),
                             pipeline_mode=mode if resident else None),  # alpha
            ],
            out_specs=pl.BlockSpec((tr, tn), lambda i, j: (i, j)),
            scratch_shapes=[pltpu.VMEM((tr, dp), jnp.bfloat16)],      # LN(y)
            compiler_params=pltpu.CompilerParams(
                dimension_semantics=("parallel", "arbitrary"),
                vmem_limit_bytes=_vmem_limit_bytes()),
        )

    args = (xf, gamma2, beta2, wt, bias2, alpha2)
    try:
        out = _build(True)(*args)
    except Exception:
        # Fallback for runtimes that reject pl.Buffered(1) single-buffering.
        out = _build(False)(*args)

    if dp != D:
        out = out[:, :D]
    return out.reshape(B, N, D)


def _reference(x, gamma, beta, weight, bias, alpha, eps=1e-5):
    xf = x.astype(jnp.float32)
    mean = jnp.mean(xf, axis=-1, keepdims=True)
    var = jnp.mean((xf - mean) ** 2, axis=-1, keepdims=True)
    y = (xf - mean) * jax.lax.rsqrt(var + eps)
    y = y * gamma + beta
    z = y @ weight.T + bias
    return (xf + alpha * z).astype(x.dtype)


if __name__ == "__main__":
    batch, seq, dim = 2, 8, 32
    key = jax.random.PRNGKey(0)
    kx, kw, kb = jax.random.split(key, 3)

    x = jax.random.normal(kx, (batch, seq, dim), dtype=jnp.float32)

    # LayerNorm params (PyTorch defaults).
    gamma = jnp.ones((dim,), jnp.float32)
    beta = jnp.zeros((dim,), jnp.float32)

    # core_block = Linear(dim, dim), deterministic init (uniform, like torch).
    bound = 1.0 / (dim ** 0.5)
    weight = jax.random.uniform(kw, (dim, dim), jnp.float32, -bound, bound)
    bias = jax.random.uniform(kb, (dim,), jnp.float32, -bound, bound)

    # LayerScale alpha (beta=None in LayerScale.__init__).
    alpha = jnp.full((dim,), 1e-4, jnp.float32)

    # TODO(synk): path_dropout with p > 0 (stochastic depth) is not implemented;
    #             p = 0 (the module default) is the identity and is folded away.
    out = layer_scale_forward(x, gamma, beta, weight, bias, alpha)
    out = jax.block_until_ready(out)

    ref = _reference(x, gamma, beta, weight, bias, alpha)
    assert out.shape == x.shape and out.dtype == x.dtype
    # bf16 MXU operands vs f32 reference: alpha=1e-4 keeps the absolute error
    # well inside this tolerance at these shapes.
    assert jnp.allclose(out, ref, atol=1e-5, rtol=1e-5)

    print("KERNEL_OK")
</pallas_src>

<mosaic_0001>
module attributes {stable_mosaic.version = 11 : i64} {
  func.func @_layer_scale_kernel(%arg0: i32, %arg1: i32, %arg2: memref<16x128xf32, #tpu.memory_space<vmem>>, %arg3: memref<1x128xf32, #tpu.memory_space<vmem>>, %arg4: memref<1x128xf32, #tpu.memory_space<vmem>>, %arg5: memref<128x128xbf16, #tpu.memory_space<vmem>>, %arg6: memref<1x128xf32, #tpu.memory_space<vmem>>, %arg7: memref<1x128xf32, #tpu.memory_space<vmem>>, %arg8: memref<16x128xf32, #tpu.memory_space<vmem>>, %arg9: memref<16x128xbf16, #tpu.memory_space<vmem>>) attributes {dimension_semantics = [#tpu.dimension_semantics<parallel>, #tpu.dimension_semantics<arbitrary>], iteration_bounds = array<i64: 1, 1>, scalar_prefetch = 0 : i64, scratch_operands = 1 : i64, tpu.core_type = #tpu.core_type<tc>, window_params = [{transform_indices = @transform_0, window_bounds = array<i64: 16, 128>}, {pipeline_mode = #tpu.pipeline_mode<synchronous>, transform_indices = @transform_1, window_bounds = array<i64: 1, 128>}, {pipeline_mode = #tpu.pipeline_mode<synchronous>, transform_indices = @transform_2, window_bounds = array<i64: 1, 128>}, {pipeline_mode = #tpu.pipeline_mode<synchronous>, transform_indices = @transform_3, window_bounds = array<i64: 128, 128>}, {pipeline_mode = #tpu.pipeline_mode<synchronous>, transform_indices = @transform_4, window_bounds = array<i64: 1, 128>}, {pipeline_mode = #tpu.pipeline_mode<synchronous>, transform_indices = @transform_5, window_bounds = array<i64: 1, 128>}, {transform_indices = @transform_6, window_bounds = array<i64: 16, 128>}]} {
    %c0_i32 = arith.constant 0 : i32
    %0 = arith.cmpi eq, %arg1, %c0_i32 : i32
    %1 = arith.extui %0 : i1 to i32
    %c0_i32_0 = arith.constant 0 : i32
    %2 = arith.cmpi ne, %1, %c0_i32_0 : i32
    scf.if %2 {
      %c0_11 = arith.constant 0 : index
      %c0_12 = arith.constant 0 : index
      %18 = vector.load %arg2[%c0_11, %c0_12] : memref<16x128xf32, #tpu.memory_space<vmem>>, vector<16x128xf32>
      %cst_13 = arith.constant dense<0.000000e+00> : vector<16xf32>
      %19 = vector.multi_reduction <add>, %18, %cst_13 [1] : vector<16x128xf32> to vector<16xf32>
      %20 = vector.shape_cast %19 : vector<16xf32> to vector<16x1xf32>
      %21 = arith.mulf %18, %18 : vector<16x128xf32>
      %cst_14 = arith.constant dense<0.000000e+00> : vector<16xf32>
      %22 = vector.multi_reduction <add>, %21, %cst_14 [1] : vector<16x128xf32> to vector<16xf32>
      %23 = vector.shape_cast %22 : vector<16xf32> to vector<16x1xf32>
      %cst_15 = arith.constant 3.125000e-02 : f32
      %24 = vector.broadcast %cst_15 : f32 to vector<16x1xf32>
      %25 = arith.mulf %20, %24 : vector<16x1xf32>
      %cst_16 = arith.constant 3.125000e-02 : f32
      %26 = vector.broadcast %cst_16 : f32 to vector<16x1xf32>
      %27 = arith.mulf %23, %26 : vector<16x1xf32>
      %28 = arith.mulf %25, %25 : vector<16x1xf32>
      %29 = arith.subf %27, %28 : vector<16x1xf32>
      %30 = vector.broadcast %25 : vector<16x1xf32> to vector<16x128xf32>
      %31 = arith.subf %18, %30 : vector<16x128xf32>
      %cst_17 = arith.constant 9.99999974E-6 : f32
      %32 = vector.broadcast %cst_17 : f32 to vector<16x1xf32>
      %33 = arith.addf %29, %32 : vector<16x1xf32>
      %34 = math.rsqrt %33 : vector<16x1xf32>
      %35 = vector.broadcast %34 : vector<16x1xf32> to vector<16x128xf32>
      %36 = arith.mulf %31, %35 : vector<16x128xf32>
      %c0_18 = arith.constant 0 : index
      %c0_19 = arith.constant 0 : index
      %37 = vector.load %arg3[%c0_18, %c0_19] : memref<1x128xf32, #tpu.memory_space<vmem>>, vector<1x128xf32>
      %38 = vector.broadcast %37 : vector<1x128xf32> to vector<16x128xf32>
      %39 = arith.mulf %36, %38 : vector<16x128xf32>
      %c0_20 = arith.constant 0 : index
      %c0_21 = arith.constant 0 : index
      %40 = vector.load %arg4[%c0_20, %c0_21] : memref<1x128xf32, #tpu.memory_space<vmem>>, vector<1x128xf32>
      %41 = vector.broadcast %40 : vector<1x128xf32> to vector<16x128xf32>
      %42 = arith.addf %39, %41 : vector<16x128xf32>
      %43 = arith.truncf %42 : vector<16x128xf32> to vector<16x128xbf16>
      %c0_22 = arith.constant 0 : index
      %c0_23 = arith.constant 0 : index
      %44 = vector.load %arg9[%c0_22, %c0_23] : memref<16x128xbf16, #tpu.memory_space<vmem>>, vector<16x128xbf16>
      tpu.vector_store %arg9[%c0_22, %c0_23], %43 {strides = array<i32>} : memref<16x128xbf16, #tpu.memory_space<vmem>>, vector<16x128xbf16>,
    } else {
    }
    %c0 = arith.constant 0 : index
    %c0_1 = arith.constant 0 : index
    %3 = vector.load %arg9[%c0, %c0_1] : memref<16x128xbf16, #tpu.memory_space<vmem>>, vector<16x128xbf16>
    %c0_2 = arith.constant 0 : index
    %c0_3 = arith.constant 0 : index
    %4 = vector.load %arg5[%c0_2, %c0_3] : memref<128x128xbf16, #tpu.memory_space<vmem>>, vector<128x128xbf16>
    %cst = arith.constant dense<0.000000e+00> : vector<16x128xf32>
    %5 = tpu.matmul %3, %4, %cst {dimension_numbers = #tpu.dot_dimension_numbers<[1], [0], [0], [1], [0, 0, 1, 1], [], []>} : vector<16x128xbf16>, vector<128x128xbf16>, vector<16x128xf32> -> vector<16x128xf32>
    %c0_4 = arith.constant 0 : index
    %c0_5 = arith.constant 0 : index
    %6 = vector.load %arg6[%c0_4, %c0_5] : memref<1x128xf32, #tpu.memory_space<vmem>>, vector<1x128xf32>
    %7 = vector.broadcast %6 : vector<1x128xf32> to vector<16x128xf32>
    %8 = arith.addf %5, %7 : vector<16x128xf32>
    %c128_i32 = arith.constant 128 : i32
    %9 = arith.muli %arg1, %c128_i32 : i32
    %10 = tpu.assume_multiple %9, 128 : i32
    %c0_6 = arith.constant 0 : index
    %11 = arith.index_cast %10 : i32 to index
    %12 = vector.load %arg2[%c0_6, %11] : memref<16x128xf32, #tpu.memory_space<vmem>>, vector<16x128xf32>
    %c0_7 = arith.constant 0 : index
    %c0_8 = arith.constant 0 : index
    %13 = vector.load %arg7[%c0_7, %c0_8] : memref<1x128xf32, #tpu.memory_space<vmem>>, vector<1x128xf32>
    %14 = vector.broadcast %13 : vector<1x128xf32> to vector<16x128xf32>
    %15 = arith.mulf %14, %8 : vector<16x128xf32>
    %16 = arith.addf %12, %15 : vector<16x128xf32>
    %c0_9 = arith.constant 0 : index
    %c0_10 = arith.constant 0 : index
    %17 = vector.load %arg8[%c0_9, %c0_10] : memref<16x128xf32, #tpu.memory_space<vmem>>, vector<16x128xf32>
    tpu.vector_store %arg8[%c0_9, %c0_10], %16 {strides = array<i32>} : memref<16x128xf32, #tpu.memory_space<vmem>>, vector<16x128xf32>,
    return
  }
  func.func @transform_0(%arg0: i32, %arg1: i32) -> (i32, i32) {
    %c0_i32 = arith.constant 0 : i32
    %c0_i32_0 = arith.constant 0 : i32
    return %arg0, %c0_i32 : i32, i32
  }
  func.func @transform_1(%arg0: i32, %arg1: i32) -> (i32, i32) {
    %c0_i32 = arith.constant 0 : i32
    %c0_i32_0 = arith.constant 0 : i32
    %c0_i32_1 = arith.constant 0 : i32
    return %c0_i32, %c0_i32_0 : i32, i32
  }
  func.func @transform_2(%arg0: i32, %arg1: i32) -> (i32, i32) {
    %c0_i32 = arith.constant 0 : i32
    %c0_i32_0 = arith.constant 0 : i32
    %c0_i32_1 = arith.constant 0 : i32
    return %c0_i32, %c0_i32_0 : i32, i32
  }
  func.func @transform_3(%arg0: i32, %arg1: i32) -> (i32, i32) {
    %c0_i32 = arith.constant 0 : i32
    %c0_i32_0 = arith.constant 0 : i32
    return %c0_i32, %arg1 : i32, i32
  }
  func.func @transform_4(%arg0: i32, %arg1: i32) -> (i32, i32) {
    %c0_i32 = arith.constant 0 : i32
    %c0_i32_0 = arith.constant 0 : i32
    return %c0_i32, %arg1 : i32, i32
  }
  func.func @transform_5(%arg0: i32, %arg1: i32) -> (i32, i32) {
    %c0_i32 = arith.constant 0 : i32
    %c0_i32_0 = arith.constant 0 : i32
    return %c0_i32, %arg1 : i32, i32
  }
  func.func @transform_6(%arg0: i32, %arg1: i32) -> (i32, i32) {
    %c0_i32 = arith.constant 0 : i32
    return %arg0, %arg1 : i32, i32
  }
}

module attributes {stable_mosaic.version = 11 : i64} {
  func.func @_layer_scale_kernel(%arg0: i32, %arg1: i32, %arg2: memref<16x128xf32, #tpu.memory_space<vmem>>, %arg3: memref<1x128xf32, #tpu.memory_space<vmem>>, %arg4: memref<1x128xf32, #tpu.memory_space<vmem>>, %arg5: memref<128x128xbf16, #tpu.memory_space<vmem>>, %arg6: memref<1x128xf32, #tpu.memory_space<vmem>>, %arg7: memref<1x128xf32, #tpu.memory_space<vmem>>, %arg8: memref<16x128xf32, #tpu.memory_space<vmem>>, %arg9: memref<16x128xbf16, #tpu.memory_space<vmem>>) attributes {dimension_semantics = [#tpu.dimension_semantics<parallel>, #tpu.dimension_semantics<arbitrary>], iteration_bounds = array<i64: 1, 1>, scalar_prefetch = 0 : i64, scratch_operands = 1 : i64, tpu.core_type = #tpu.core_type<tc>, window_params = [{transform_indices = @transform_0, window_bounds = array<i64: 16, 128>}, {pipeline_mode = #tpu.pipeline_mode<synchronous>, transform_indices = @transform_1, window_bounds = array<i64: 1, 128>}, {pipeline_mode = #tpu.pipeline_mode<synchronous>, transform_indices = @transform_2, window_bounds = array<i64: 1, 128>}, {transform_indices = @transform_3, window_bounds = array<i64: 128, 128>}, {transform_indices = @transform_4, window_bounds = array<i64: 1, 128>}, {transform_indices = @transform_5, window_bounds = array<i64: 1, 128>}, {transform_indices = @transform_6, window_bounds = array<i64: 16, 128>}]} {
    %c0_i32 = arith.constant 0 : i32
    %0 = arith.cmpi eq, %arg1, %c0_i32 : i32
    %1 = arith.extui %0 : i1 to i32
    %c0_i32_0 = arith.constant 0 : i32
    %2 = arith.cmpi ne, %1, %c0_i32_0 : i32
    scf.if %2 {
      %c0_11 = arith.constant 0 : index
      %c0_12 = arith.constant 0 : index
      %18 = vector.load %arg2[%c0_11, %c0_12] : memref<16x128xf32, #tpu.memory_space<vmem>>, vector<16x128xf32>
      %cst_13 = arith.constant dense<0.000000e+00> : vector<16xf32>
      %19 = vector.multi_reduction <add>, %18, %cst_13 [1] : vector<16x128xf32> to vector<16xf32>
      %20 = vector.shape_cast %19 : vector<16xf32> to vector<16x1xf32>
      %21 = arith.mulf %18, %18 : vector<16x128xf32>
      %cst_14 = arith.constant dense<0.000000e+00> : vector<16xf32>
      %22 = vector.multi_reduction <add>, %21, %cst_14 [1] : vector<16x128xf32> to vector<16xf32>
      %23 = vector.shape_cast %22 : vector<16xf32> to vector<16x1xf32>
      %cst_15 = arith.constant 3.125000e-02 : f32
      %24 = vector.broadcast %cst_15 : f32 to vector<16x1xf32>
      %25 = arith.mulf %20, %24 : vector<16x1xf32>
      %cst_16 = arith.constant 3.125000e-02 : f32
      %26 = vector.broadcast %cst_16 : f32 to vector<16x1xf32>
      %27 = arith.mulf %23, %26 : vector<16x1xf32>
      %28 = arith.mulf %25, %25 : vector<16x1xf32>
      %29 = arith.subf %27, %28 : vector<16x1xf32>
      %30 = vector.broadcast %25 : vector<16x1xf32> to vector<16x128xf32>
      %31 = arith.subf %18, %30 : vector<16x128xf32>
      %cst_17 = arith.constant 9.99999974E-6 : f32
      %32 = vector.broadcast %cst_17 : f32 to vector<16x1xf32>
      %33 = arith.addf %29, %32 : vector<16x1xf32>
      %34 = math.rsqrt %33 : vector<16x1xf32>
      %35 = vector.broadcast %34 : vector<16x1xf32> to vector<16x128xf32>
      %36 = arith.mulf %31, %35 : vector<16x128xf32>
      %c0_18 = arith.constant 0 : index
      %c0_19 = arith.constant 0 : index
      %37 = vector.load %arg3[%c0_18, %c0_19] : memref<1x128xf32, #tpu.memory_space<vmem>>, vector<1x128xf32>
      %38 = vector.broadcast %37 : vector<1x128xf32> to vector<16x128xf32>
      %39 = arith.mulf %36, %38 : vector<16x128xf32>
      %c0_20 = arith.constant 0 : index
      %c0_21 = arith.constant 0 : index
      %40 = vector.load %arg4[%c0_20, %c0_21] : memref<1x128xf32, #tpu.memory_space<vmem>>, vector<1x128xf32>
      %41 = vector.broadcast %40 : vector<1x128xf32> to vector<16x128xf32>
      %42 = arith.addf %39, %41 : vector<16x128xf32>
      %43 = arith.truncf %42 : vector<16x128xf32> to vector<16x128xbf16>
      %c0_22 = arith.constant 0 : index
      %c0_23 = arith.constant 0 : index
      %44 = vector.load %arg9[%c0_22, %c0_23] : memref<16x128xbf16, #tpu.memory_space<vmem>>, vector<16x128xbf16>
      tpu.vector_store %arg9[%c0_22, %c0_23], %43 {strides = array<i32>} : memref<16x128xbf16, #tpu.memory_space<vmem>>, vector<16x128xbf16>,
    } else {
    }
    %c0 = arith.constant 0 : index
    %c0_1 = arith.constant 0 : index
    %3 = vector.load %arg9[%c0, %c0_1] : memref<16x128xbf16, #tpu.memory_space<vmem>>, vector<16x128xbf16>
    %c0_2 = arith.constant 0 : index
    %c0_3 = arith.constant 0 : index
    %4 = vector.load %arg5[%c0_2, %c0_3] : memref<128x128xbf16, #tpu.memory_space<vmem>>, vector<128x128xbf16>
    %cst = arith.constant dense<0.000000e+00> : vector<16x128xf32>
    %5 = tpu.matmul %3, %4, %cst {dimension_numbers = #tpu.dot_dimension_numbers<[1], [0], [0], [1], [0, 0, 1, 1], [], []>} : vector<16x128xbf16>, vector<128x128xbf16>, vector<16x128xf32> -> vector<16x128xf32>
    %c0_4 = arith.constant 0 : index
    %c0_5 = arith.constant 0 : index
    %6 = vector.load %arg6[%c0_4, %c0_5] : memref<1x128xf32, #tpu.memory_space<vmem>>, vector<1x128xf32>
    %7 = vector.broadcast %6 : vector<1x128xf32> to vector<16x128xf32>
    %8 = arith.addf %5, %7 : vector<16x128xf32>
    %c128_i32 = arith.constant 128 : i32
    %9 = arith.muli %arg1, %c128_i32 : i32
    %10 = tpu.assume_multiple %9, 128 : i32
    %c0_6 = arith.constant 0 : index
    %11 = arith.index_cast %10 : i32 to index
    %12 = vector.load %arg2[%c0_6, %11] : memref<16x128xf32, #tpu.memory_space<vmem>>, vector<16x128xf32>
    %c0_7 = arith.constant 0 : index
    %c0_8 = arith.constant 0 : index
    %13 = vector.load %arg7[%c0_7, %c0_8] : memref<1x128xf32, #tpu.memory_space<vmem>>, vector<1x128xf32>
    %14 = vector.broadcast %13 : vector<1x128xf32> to vector<16x128xf32>
    %15 = arith.mulf %14, %8 : vector<16x128xf32>
    %16 = arith.addf %12, %15 : vector<16x128xf32>
    %c0_9 = arith.constant 0 : index
    %c0_10 = arith.constant 0 : index
    %17 = vector.load %arg8[%c0_9, %c0_10] : memref<16x128xf32, #tpu.memory_space<vmem>>, vector<16x128xf32>
    tpu.vector_store %arg8[%c0_9, %c0_10], %16 {strides = array<i32>} : memref<16x128xf32, #tpu.memory_space<vmem>>, vector<16x128xf32>,
    return
  }
  func.func @transform_0(%arg0: i32, %arg1: i32) -> (i32, i32) {
    %c0_i32 = arith.constant 0 : i32
    %c0_i32_0 = arith.constant 0 : i32
    return %arg0, %c0_i32 : i32, i32
  }
  func.func @transform_1(%arg0: i32, %arg1: i32) -> (i32, i32) {
    %c0_i32 = arith.constant 0 : i32
    %c0_i32_0 = arith.constant 0 : i32
    %c0_i32_1 = arith.constant 0 : i32
    return %c0_i32, %c0_i32_0 : i32, i32
  }
  func.func @transform_2(%arg0: i32, %arg1: i32) -> (i32, i32) {
    %c0_i32 = arith.constant 0 : i32
    %c0_i32_0 = arith.constant 0 : i32
    %c0_i32_1 = arith.constant 0 : i32
    return %c0_i32, %c0_i32_0 : i32, i32
  }
  func.func @transform_3(%arg0: i32, %arg1: i32) -> (i32, i32) {
    %c0_i32 = arith.constant 0 : i32
    %c0_i32_0 = arith.constant 0 : i32
    return %c0_i32, %arg1 : i32, i32
  }
  func.func @transform_4(%arg0: i32, %arg1: i32) -> (i32, i32) {
    %c0_i32 = arith.constant 0 : i32
    %c0_i32_0 = arith.constant 0 : i32
    return %c0_i32, %arg1 : i32, i32
  }
  func.func @transform_5(%arg0: i32, %arg1: i32) -> (i32, i32) {
    %c0_i32 = arith.constant 0 : i32
    %c0_i32_0 = arith.constant 0 : i32
    return %c0_i32, %arg1 : i32, i32
  }
  func.func @transform_6(%arg0: i32, %arg1: i32) -> (i32, i32) {
    %c0_i32 = arith.constant 0 : i32
    return %arg0, %arg1 : i32, i32
  }
}

</mosaic_0001>

<bundles_post_ra>
// kernel: tpu_custom_call.1
= control target key start
LH: loop header
LB: loop body
LE: loop exit
PB: predicated region body
PF: predicated region fallthrough
CT: control target
= control target key end

     0   :  { %11 = vsyncpa [#allocation4], 0  ;;  %s693_s0 = inlined_call_operand.hbm [shape: f32[16,128], index: 0, kind: input, shape index: {}]   ;;  %s694_s1 = inlined_call_operand.hbm [shape: f32[1,128], index: 1, kind: input, shape index: {}]   ;;  %s695_s2 = inlined_call_operand.hbm [shape: f32[1,128], index: 2, kind: input, shape index: {}]   ;;  %s696_s3 = inlined_call_operand.hbm [shape: bf16[128,128], index: 3, kind: input, shape index: {}]   ;;  %s697_s4 = inlined_call_operand.hbm [shape: f32[1,128], index: 4, kind: input, shape index: {}]   ;;  %s698_s5 = inlined_call_operand.hbm [shape: f32[1,128], index: 5, kind: input, shape index: {}]   ;;  %s699_s6 = inlined_call_operand.hbm [shape: f32[16,128], index: 6, kind: output, shape index: {}]  }
   0x1   :  { %12 = vsyncpa [#allocation7], 0 }
   0x2   :  { %13 = vsyncpa [#allocation10], 0 }
   0x3   :  { %14 = vsyncpa [#allocation13], 0 }
   0x4   :  { %15 = vsyncpa [#allocation5], 0  ;;  %s534_s21 = smov [#allocation6]   ;;  %s535_s23 = smov [#allocation9]  }
   0x5   :  { %s34_s22 = sshll.u32 %s534_s21, 4  ;;  %s53_s24 = sshll.u32 %s535_s23, 4  ;;  %s35_s22 = int_to_ptr.vmem [resolvable:$true] %s34_s22  ;;  %s582_s24 = int_to_ptr.vmem [resolvable:$true] %s53_s24 }
   0x6   :  { %s370_s27 = scalar_lea.hbm %s694_s1, 16 }
   0x7   :  { %p371_p0 = scmp.ne.s32.totalorder %s694_s1, %s370_s27  ;;  %p374_p1 = scmp.lt.u32.totalorder %s370_s27, %s694_s1 }
   0x9   :  { %p376_p2 = pnand %p374_p1, %p371_p0 }
   0xb   :  { %379 = shalt.err (!%p376_p2)
}
   0xc   :  { %s380_s8 = scalar_lea.vmem %s35_s22, 16  ;;  %s384_s9 = scalar_lea.vmem %s35_s22, 32 }
   0xd   :  { %p381_p3 = scmp.ne.s32.totalorder %s35_s22, %s380_s8  ;;  %p385_p4 = scmp.lt.s32.totalorder %s35_s22, %s35_s22 }
   0xe   :  { %p386_p5 = scmp.lt.s32.totalorder %s384_s9, %s380_s8 }
  0x10   :  { %p387_p6 = por %p386_p5, %p385_p4 }
  0x12   :  { %p388_p7 = pnand %p387_p6, %p381_p3 }
  0x14   :  { %391 = shalt.err (!%p388_p7)
}
  0x15   :  { %37 = dma.hbm_to_vmem [thread:$0]  %s694_s1, 16, %s35_s22, [#allocation7]  }
  0x16   :  { %s392_s14 = scalar_lea.hbm %s696_s3, 1024 }
  0x17   :  { %p393_p8 = scmp.ne.s32.totalorder %s696_s3, %s392_s14  ;;  %p396_p9 = scmp.lt.u32.totalorder %s392_s14, %s696_s3 }
  0x19   :  { %p398_p10 = pnand %p396_p9, %p393_p8 }
  0x1b   :  { %401 = shalt.err (!%p398_p10)
}
  0x1c   :  { %s402_s19 = scalar_lea.vmem %s582_s24, 1024  ;;  %p407_p12 = scmp.lt.s32.totalorder %s582_s24, %s582_s24 }
  0x1d   :  { %p403_p11 = scmp.ne.s32.totalorder %s582_s24, %s402_s19  ;;  %p408_p13 = scmp.lt.s32.totalorder %s402_s19, %s402_s19 }
  0x1f   :  { %p409_p0 = por %p408_p13, %p407_p12 }
  0x21   :  { %p410_p1 = pnand %p409_p0, %p403_p11 }
  0x23   :  { %413 = shalt.err (!%p410_p1)
}
  0x24   :  { %s536_s1 = smov 64   ;;  %s537_s20 = smov 4  }
  0x25   :  { %59 = dma.hbm_to_vmem [thread:$0]  %s696_s3, 1024, %s582_s24, [#allocation10], %s536_s1, %s536_s1, %s537_s20  }
  0x26   :  { %s538_s23 = smov [#allocation3]   ;;  %s414_s28 = scalar_lea.hbm %s693_s0, 256 }
  0x27   :  { %s21_s25 = sshll.u32 %s538_s23, 4  ;;  %p415_p2 = scmp.ne.s32.totalorder %s693_s0, %s414_s28  ;;  %s22_s25 = int_to_ptr.vmem [resolvable:$true] %s21_s25 }
  0x28   :  { %p418_p3 = scmp.lt.u32.totalorder %s414_s28, %s693_s0 }
  0x2a   :  { %p420_p4 = pnand %p418_p3, %p415_p2 }
  0x2c   :  { %423 = shalt.err (!%p420_p4)
}
  0x2d   :  { %s424_s9 = scalar_lea.vmem %s22_s25, 256  ;;  %p429_p6 = scmp.lt.s32.totalorder %s22_s25, %s22_s25 }
  0x2e   :  { %p425_p5 = scmp.ne.s32.totalorder %s22_s25, %s424_s9  ;;  %p430_p7 = scmp.lt.s32.totalorder %s424_s9, %s424_s9 }
  0x30   :  { %p431_p8 = por %p430_p7, %p429_p6 }
  0x32   :  { %p432_p9 = pnand %p431_p8, %p425_p5 }
  0x34   :  { %435 = shalt.err (!%p432_p9)
}
  0x35   :  { %s539_s3 = smov 128   ;;  %s540_s24 = smov 8  }
  0x36   :  { %27 = dma.hbm_to_vmem [thread:$0]  %s693_s0, 256, %s22_s25, [#allocation4], %s539_s3, %s539_s3, %s540_s24  }
  0x37   :  { %s541_s12 = smov [#allocation8]   ;;  %s542_s14 = smov [#allocation11]  }
  0x38   :  { %s44_s13 = sshll.u32 %s541_s12, 4  ;;  %s66_s15 = sshll.u32 %s542_s14, 4  ;;  %s45_s13 = int_to_ptr.vmem [resolvable:$true] %s44_s13  ;;  %s67_s15 = int_to_ptr.vmem [resolvable:$true] %s66_s15 }
  0x39   :  { %s436_s18 = scalar_lea.hbm %s695_s2, 16 }
  0x3a   :  { %p437_p10 = scmp.ne.s32.totalorder %s695_s2, %s436_s18  ;;  %p440_p11 = scmp.lt.u32.totalorder %s436_s18, %s695_s2 }
  0x3c   :  { %p442_p12 = pnand %p440_p11, %p437_p10 }
  0x3e   :  { %445 = shalt.err (!%p442_p12)
}
  0x3f   :  { %s446_s0 = scalar_lea.vmem %s45_s13, 16  ;;  %s450_s22 = scalar_lea.vmem %s45_s13, 32 }
  0x40   :  { %p447_p13 = scmp.ne.s32.totalorder %s45_s13, %s446_s0  ;;  %p451_p0 = scmp.lt.s32.totalorder %s45_s13, %s45_s13 }
  0x41   :  { %p452_p1 = scmp.lt.s32.totalorder %s450_s22, %s446_s0 }
  0x43   :  { %p453_p2 = por %p452_p1, %p451_p0 }
  0x45   :  { %p454_p3 = pnand %p453_p2, %p447_p13 }
  0x47   :  { %457 = shalt.err (!%p454_p3)
}
  0x48   :  { %47 = dma.hbm_to_vmem [thread:$0]  %s695_s2, 16, %s45_s13, [#allocation7]  }
  0x49   :  { %s458_s28 = scalar_lea.hbm %s697_s4, 16 }
  0x4a   :  { %p459_p4 = scmp.ne.s32.totalorder %s697_s4, %s458_s28  ;;  %p462_p5 = scmp.lt.u32.totalorder %s458_s28, %s697_s4 }
  0x4c   :  { %p464_p6 = pnand %p462_p5, %p459_p4 }
  0x4e   :  { %467 = shalt.err (!%p464_p6)
}
  0x4f   :  { %s468_s9 = scalar_lea.vmem %s67_s15, 16  ;;  %s472_s10 = scalar_lea.vmem %s67_s15, 32 }
  0x50   :  { %p469_p7 = scmp.ne.s32.totalorder %s67_s15, %s468_s9  ;;  %p473_p8 = scmp.lt.s32.totalorder %s67_s15, %s67_s15 }
  0x51   :  { %p474_p9 = scmp.lt.s32.totalorder %s472_s10, %s468_s9 }
  0x53   :  { %p475_p10 = por %p474_p9, %p473_p8 }
  0x55   :  { %p476_p11 = pnand %p475_p10, %p469_p7 }
  0x57   :  { %479 = shalt.err (!%p476_p11)
}
  0x58   :  { %69 = dma.hbm_to_vmem [thread:$0]  %s697_s4, 16, %s67_s15, [#allocation10]  }
  0x59   :  { %s543_s12 = smov [#allocation12]   ;;  %s480_s17 = scalar_lea.hbm %s698_s5, 16 }
  0x5a   :  { %s76_s13 = sshll.u32 %s543_s12, 4  ;;  %p481_p12 = scmp.ne.s32.totalorder %s698_s5, %s480_s17  ;;  %s77_s13 = int_to_ptr.vmem [resolvable:$true] %s76_s13 }
  0x5b   :  { %p484_p13 = scmp.lt.u32.totalorder %s480_s17, %s698_s5 }
  0x5d   :  { %p486_p0 = pnand %p484_p13, %p481_p12 }
  0x5f   :  { %489 = shalt.err (!%p486_p0)
}
  0x60   :  { %s490_s21 = scalar_lea.vmem %s77_s13, 16  ;;  %s494_s4 = scalar_lea.vmem %s77_s13, 32 }
  0x61   :  { %p491_p1 = scmp.ne.s32.totalorder %s77_s13, %s490_s21  ;;  %p495_p2 = scmp.lt.s32.totalorder %s77_s13, %s77_s13 }
  0x62   :  { %p496_p3 = scmp.lt.s32.totalorder %s494_s4, %s490_s21 }
  0x64   :  { %p497_p4 = por %p496_p3, %p495_p2 }
  0x66   :  { %p498_p5 = pnand %p497_p4, %p491_p1 }
  0x68   :  { %501 = shalt.err (!%p498_p5)
}
  0x69   :  { %79 = dma.hbm_to_vmem [thread:$0]  %s698_s5, 16, %s77_s13, [#allocation13]  }
  0x6a   :  { %524 = dma.done.wait [#allocation4], 256  }
  0x6b   :  { %525 = vsyncadd [#allocation4], 4294967040 }
  0x6c   :  { %526 = dma.done.wait [#allocation7], 32  }
  0x6d   :  { %527 = vsyncadd [#allocation7], 4294967264 }
  0x6e   :  { %528 = dma.done.wait [#allocation10], 1040  }
  0x6f   :  { %529 = vsyncadd [#allocation10], 4294966256 }
  0x70   :  { %530 = dma.done.wait [#allocation13], 16  }
  0x71   :  { %531 = vsyncadd [#allocation13], 4294967280  ;;  %v544_v0 = vmov 0.0   ;;  %v664_v1 = vld [vmem:[#allocation3] sm:$0xff]  ;;  %v666_v2 = vld [vmem:[#allocation3 + $0x8] sm:$0xff]  ;;  %vm545_vm0 = vmmov 0  }
  0x72   :  { %325 = vmatprep.subr.bf16.mxu0 %v544_v0  ;;  %105 = vadd.xlane.f32.xlu0 %v664_v1  ;;  %v109_v3 = vmul.f32 %v664_v1, %v664_v1  ;;  %v110_v4 = vmul.f32 %v666_v2, %v666_v2  ;;  %v358_v5 = vld [vmem:[#allocation9] sm:$0xff]   ;;  %v359_v6 = vld [vmem:[#allocation9 + $0x8] sm:$0xff]   ;;  %v360_v7 = vld [vmem:[#allocation9 + $0x10] sm:$0xff]   ;;  %s546_s5 = smov [#allocation14]  }
  0x73   :  { %326 = vmatpush3.bf16.msra.mxu0 %v358_v5  ;;  %v361_v8 = vld [vmem:[#allocation9 + $0x18] sm:$0xff]   ;;  %v362_v9 = vld [vmem:[#allocation9 + $0x20] sm:$0xff]   ;;  %341 = vmatprep.mubr.msk.bf16.mxu0 %vm545_vm0, %v544_v0  ;;  %v363_v10 = vld [vmem:[#allocation9 + $0x28] sm:$0xff]   ;;  %s288_s22 = sshll.u32 %s546_s5, 4  ;;  %s289_s22 = int_to_ptr.vmem [resolvable:$true] %s288_s22 }
  0x74   :  { %111 = vadd.xlane.f32.xlu1 %v109_v3  ;;  %327 = vmatprep.subr.bf16.mxu0 %v544_v0  ;;  %v364_v11 = vld [vmem:[#allocation9 + $0x30] sm:$0xff]   ;;  %v365_v12 = vld [vmem:[#allocation9 + $0x38] sm:$0xff]   ;;  %v306_v40 = vld [vmem:[#allocation11] ss:$0 sm:$0xff]  ;;  %s502_s23 = scalar_lea.vmem %s289_s22, 256  ;;  %p507_p7 = scmp.lt.s32.totalorder %s289_s22, %s289_s22 }
  0x75   :  { %v304_v30 = vld [vmem:[#allocation6] ss:$0 sm:$0xff]  ;;  %v305_v35 = vld [vmem:[#allocation8] ss:$0 sm:$0xff]  ;;  %v315_v42 = vld [vmem:[#allocation12] ss:$0 sm:$0xff]  ;;  %p503_p6 = scmp.ne.s32.totalorder %s289_s22, %s502_s23  ;;  %p508_p8 = scmp.lt.s32.totalorder %s502_s23, %s502_s23 }
  0x76   :  { %107 = vadd.xlane.f32.xlu0 %v666_v2 }
  0x77   :  { %328 = vmatpush3.bf16.msra.mxu0 %v359_v6  ;;  %p509_p9 = por %p508_p8, %p507_p7 }
  0x78   :  { %113 = vadd.xlane.f32.xlu1 %v110_v4  ;;  %329 = vmatprep.subr.bf16.mxu0 %v544_v0 }
  0x79   :  { %p510_p10 = pnand %p509_p9, %p503_p6 }
  0x7b   :  { %330 = vmatpush3.bf16.msra.mxu0 %v360_v7 }
  0x7c   :  { %331 = vmatprep.subr.bf16.mxu0 %v544_v0 }
  0x7f   :  { %332 = vmatpush3.bf16.msra.mxu0 %v361_v8 }
  0x80   :  { %333 = vmatprep.subr.bf16.mxu0 %v544_v0 }
  0x83   :  { %334 = vmatpush3.bf16.msra.mxu0 %v362_v9 }
  0x84   :  { %335 = vmatprep.subr.bf16.mxu0 %v544_v0 }
  0x87   :  { %336 = vmatpush3.bf16.msra.mxu0 %v363_v10 }
  0x88   :  { %337 = vmatprep.subr.bf16.mxu0 %v544_v0 }
  0x8b   :  { %338 = vmatpush3.bf16.msra.mxu0 %v364_v11 }
  0x8c   :  { %339 = vmatprep.subr.bf16.mxu0 %v544_v0 }
  0x8f   :  { %340 = vmatpush3.bf16.msra.mxu0 %v365_v12 }
  0xff   :  { %v106_v13 = vpop.xlane.xlu0 %105 }
 0x100   :  { %v115_v14 = vmul.f32 0.03125, %v106_v13 }
 0x101   :  { %v112_v15 = vpop.xlane.xlu1 %111 }
 0x102   :  { %v119_v16 = vmul.f32 %v115_v14, %v115_v14  ;;  %v117_v17 = vmul.f32 0.03125, %v112_v15  ;;  %v123_v27 = vsub.f32 %v664_v1, %v115_v14 }
 0x103   :  { %v108_v18 = vpop.xlane.xlu0 %107 }
 0x104   :  { %v121_v19 = vsub.f32 %v117_v17, %v119_v16  ;;  %v116_v20 = vmul.f32 0.03125, %v108_v18 }
 0x105   :  { %v114_v21 = vpop.xlane.xlu1 %113 }
 0x106   :  { %v125_v22 = vadd.f32 1e-05, %v121_v19  ;;  %v120_v23 = vmul.f32 %v116_v20, %v116_v20  ;;  %v118_v24 = vmul.f32 0.03125, %v114_v21  ;;  %v124_v31 = vsub.f32 %v666_v2, %v116_v20 }
 0x108   :  { %366 = vrsqrt.f32 %v125_v22  ;;  %v122_v25 = vsub.f32 %v118_v24, %v120_v23 }
 0x10a   :  { %v126_v26 = vadd.f32 1e-05, %v122_v25 }
 0x10c   :  { %368 = vrsqrt.f32 %v126_v26 }
 0x112   :  { %v367_v28 = vpop.eup %366 }
 0x113   :  { %v129_v29 = vmul.f32 %v367_v28, %v123_v27 }
 0x115   :  { %v138_v34 = vmul.f32 %v304_v30, %v129_v29 }
 0x116   :  { %v369_v32 = vpop.eup %368 }
 0x117   :  { %v130_v33 = vmul.f32 %v369_v32, %v124_v31  ;;  %v147_v37 = vadd.f32 %v305_v35, %v138_v34 }
 0x119   :  { %v139_v36 = vmul.f32 %v304_v30, %v130_v33 }
 0x11b   :  { %v148_v38 = vadd.f32 %v305_v35, %v139_v36 }
 0x11d   :  { %v149_v39 = vpack.c.bf16 %v148_v38, %v147_v37 }
 0x11f   :  { %342 = vmatmul.mubr.bf16.vlgmr.msra.gmra.mrb[0].mxu0 %v149_v39 }
 0x1f2   :  { %v257_v41 = vpop.f32.mrb[0].mxu0 }
 0x1f3   :  { %v258_v43 = vadd.f32 %v306_v40, %v257_v41  ;;  %v343_v44 = vpop.f32.mrb[1].mxu0 }
 0x1f4   :  { %v260_v45 = vpop.f32.mrb[2].mxu0 }
 0x1f5   :  { %v277_v46 = vmul.f32 %v315_v42, %v258_v43  ;;  %v261_v47 = vadd.f32 %v306_v40, %v260_v45  ;;  %v344_v48 = vpop.f32.mrb[3].mxu0 }
 0x1f7   :  { %v279_v49 = vadd.f32 %v277_v46, %v664_v1  ;;  %v278_v50 = vmul.f32 %v315_v42, %v261_v47 }
 0x1f9   :  { %281 = vst [vmem:[#allocation14] sm:$0xff] %v279_v49  ;;  %v280_v51 = vadd.f32 %v278_v50, %v666_v2 }
 0x1fb   :  { %282 = vst [vmem:[#allocation14 + $0x8] sm:$0xff] %v280_v51 }
 0x1fc   :  { %513 = shalt.err (!%p510_p10)
}
 0x1fd   :  { %s514_s27 = scalar_lea.hbm %s699_s6, 256 }
 0x1fe   :  { %p515_p11 = scmp.ne.s32.totalorder %s699_s6, %s514_s27  ;;  %p518_p12 = scmp.lt.u32.totalorder %s514_s27, %s699_s6 }
 0x200   :  { %p520_p13 = pnand %p518_p12, %p515_p11 }
 0x202   :  { %523 = shalt.err (!%p520_p13)
}
 0x203   :  { %294 = dma.vmem_to_hbm [thread:$0]  %s289_s22, 256, %s699_s6, [#allocation5], %s539_s3, %s539_s3, %s540_s24  }
 0x204   :  { %532 = dma.done.wait [#allocation5], 256  }
 0x205   :  { %533 = vsyncadd [#allocation5], 4294967040 }
 0x206   :  { %298 = vsyncpa [#allocation4], 1 }
 0x207   :  { %299 = vsyncpa [#allocation7], 1 }
 0x208   :  { %300 = vsyncpa [#allocation10], 1 }
 0x209   :  { %301 = vsyncpa [#allocation13], 1 }
 0x20a   :  { %302 = vsyncpa [#allocation5], 1 }

// kernel: tpu_custom_call.1
= control target key start
LH: loop header
LB: loop body
LE: loop exit
PB: predicated region body
PF: predicated region fallthrough
CT: control target
= control target key end

     0   :  { %11 = vsyncpa [#allocation4], 0  ;;  %s693_s0 = inlined_call_operand.hbm [shape: f32[16,128], index: 0, kind: input, shape index: {}]   ;;  %s694_s1 = inlined_call_operand.hbm [shape: f32[1,128], index: 1, kind: input, shape index: {}]   ;;  %s695_s2 = inlined_call_operand.hbm [shape: f32[1,128], index: 2, kind: input, shape index: {}]   ;;  %s696_s3 = inlined_call_operand.hbm [shape: bf16[128,128], index: 3, kind: input, shape index: {}]   ;;  %s697_s4 = inlined_call_operand.hbm [shape: f32[1,128], index: 4, kind: input, shape index: {}]   ;;  %s698_s5 = inlined_call_operand.hbm [shape: f32[1,128], index: 5, kind: input, shape index: {}]   ;;  %s699_s6 = inlined_call_operand.hbm [shape: f32[16,128], index: 6, kind: output, shape index: {}]  }
   0x1   :  { %12 = vsyncpa [#allocation7], 0 }
   0x2   :  { %13 = vsyncpa [#allocation10], 0 }
   0x3   :  { %14 = vsyncpa [#allocation13], 0 }
   0x4   :  { %15 = vsyncpa [#allocation5], 0  ;;  %s534_s21 = smov [#allocation6]   ;;  %s535_s23 = smov [#allocation9]  }
   0x5   :  { %s34_s22 = sshll.u32 %s534_s21, 4  ;;  %s53_s24 = sshll.u32 %s535_s23, 4  ;;  %s35_s22 = int_to_ptr.vmem [resolvable:$true] %s34_s22  ;;  %s582_s24 = int_to_ptr.vmem [resolvable:$true] %s53_s24 }
   0x6   :  { %s370_s27 = scalar_lea.hbm %s694_s1, 16 }
   0x7   :  { %p371_p0 = scmp.ne.s32.totalorder %s694_s1, %s370_s27  ;;  %p374_p1 = scmp.lt.u32.totalorder %s370_s27, %s694_s1 }
   0x9   :  { %p376_p2 = pnand %p374_p1, %p371_p0 }
   0xb   :  { %379 = shalt.err (!%p376_p2)
}
   0xc   :  { %s380_s8 = scalar_lea.vmem %s35_s22, 16  ;;  %s384_s9 = scalar_lea.vmem %s35_s22, 32 }
   0xd   :  { %p381_p3 = scmp.ne.s32.totalorder %s35_s22, %s380_s8  ;;  %p385_p4 = scmp.lt.s32.totalorder %s35_s22, %s35_s22 }
   0xe   :  { %p386_p5 = scmp.lt.s32.totalorder %s384_s9, %s380_s8 }
  0x10   :  { %p387_p6 = por %p386_p5, %p385_p4 }
  0x12   :  { %p388_p7 = pnand %p387_p6, %p381_p3 }
  0x14   :  { %391 = shalt.err (!%p388_p7)
}
  0x15   :  { %37 = dma.hbm_to_vmem [thread:$0]  %s694_s1, 16, %s35_s22, [#allocation7]  }
  0x16   :  { %s392_s14 = scalar_lea.hbm %s696_s3, 1024 }
  0x17   :  { %p393_p8 = scmp.ne.s32.totalorder %s696_s3, %s392_s14  ;;  %p396_p9 = scmp.lt.u32.totalorder %s392_s14, %s696_s3 }
  0x19   :  { %p398_p10 = pnand %p396_p9, %p393_p8 }
  0x1b   :  { %401 = shalt.err (!%p398_p10)
}
  0x1c   :  { %s402_s19 = scalar_lea.vmem %s582_s24, 1024  ;;  %p407_p12 = scmp.lt.s32.totalorder %s582_s24, %s582_s24 }
  0x1d   :  { %p403_p11 = scmp.ne.s32.totalorder %s582_s24, %s402_s19  ;;  %p408_p13 = scmp.lt.s32.totalorder %s402_s19, %s402_s19 }
  0x1f   :  { %p409_p0 = por %p408_p13, %p407_p12 }
  0x21   :  { %p410_p1 = pnand %p409_p0, %p403_p11 }
  0x23   :  { %413 = shalt.err (!%p410_p1)
}
  0x24   :  { %s536_s1 = smov 64   ;;  %s537_s20 = smov 4  }
  0x25   :  { %59 = dma.hbm_to_vmem [thread:$0]  %s696_s3, 1024, %s582_s24, [#allocation10], %s536_s1, %s536_s1, %s537_s20  }
  0x26   :  { %s538_s23 = smov [#allocation3]   ;;  %s414_s28 = scalar_lea.hbm %s693_s0, 256 }
  0x27   :  { %s21_s25 = sshll.u32 %s538_s23, 4  ;;  %p415_p2 = scmp.ne.s32.totalorder %s693_s0, %s414_s28  ;;  %s22_s25 = int_to_ptr.vmem [resolvable:$true] %s21_s25 }
  0x28   :  { %p418_p3 = scmp.lt.u32.totalorder %s414_s28, %s693_s0 }
  0x2a   :  { %p420_p4 = pnand %p418_p3, %p415_p2 }
  0x2c   :  { %423 = shalt.err (!%p420_p4)
}
  0x2d   :  { %s424_s9 = scalar_lea.vmem %s22_s25, 256  ;;  %p429_p6 = scmp.lt.s32.totalorder %s22_s25, %s22_s25 }
  0x2e   :  { %p425_p5 = scmp.ne.s32.totalorder %s22_s25, %s424_s9  ;;  %p430_p7 = scmp.lt.s32.totalorder %s424_s9, %s424_s9 }
  0x30   :  { %p431_p8 = por %p430_p7, %p429_p6 }
  0x32   :  { %p432_p9 = pnand %p431_p8, %p425_p5 }
  0x34   :  { %435 = shalt.err (!%p432_p9)
}
  0x35   :  { %s539_s3 = smov 128   ;;  %s540_s24 = smov 8  }
  0x36   :  { %27 = dma.hbm_to_vmem [thread:$0]  %s693_s0, 256, %s22_s25, [#allocation4], %s539_s3, %s539_s3, %s540_s24  }
  0x37   :  { %s541_s12 = smov [#allocation8]   ;;  %s542_s14 = smov [#allocation11]  }
  0x38   :  { %s44_s13 = sshll.u32 %s541_s12, 4  ;;  %s66_s15 = sshll.u32 %s542_s14, 4  ;;  %s45_s13 = int_to_ptr.vmem [resolvable:$true] %s44_s13  ;;  %s67_s15 = int_to_ptr.vmem [resolvable:$true] %s66_s15 }
  0x39   :  { %s436_s18 = scalar_lea.hbm %s695_s2, 16 }
  0x3a   :  { %p437_p10 = scmp.ne.s32.totalorder %s695_s2, %s436_s18  ;;  %p440_p11 = scmp.lt.u32.totalorder %s436_s18, %s695_s2 }
  0x3c   :  { %p442_p12 = pnand %p440_p11, %p437_p10 }
  0x3e   :  { %445 = shalt.err (!%p442_p12)
}
  0x3f   :  { %s446_s0 = scalar_lea.vmem %s45_s13, 16  ;;  %s450_s22 = scalar_lea.vmem %s45_s13, 32 }
  0x40   :  { %p447_p13 = scmp.ne.s32.totalorder %s45_s13, %s446_s0  ;;  %p451_p0 = scmp.lt.s32.totalorder %s45_s13, %s45_s13 }
  0x41   :  { %p452_p1 = scmp.lt.s32.totalorder %s450_s22, %s446_s0 }
  0x43   :  { %p453_p2 = por %p452_p1, %p451_p0 }
  0x45   :  { %p454_p3 = pnand %p453_p2, %p447_p13 }
  0x47   :  { %457 = shalt.err (!%p454_p3)
}
  0x48   :  { %47 = dma.hbm_to_vmem [thread:$0]  %s695_s2, 16, %s45_s13, [#allocation7]  }
  0x49   :  { %s458_s28 = scalar_lea.hbm %s697_s4, 16 }
  0x4a   :  { %p459_p4 = scmp.ne.s32.totalorder %s697_s4, %s458_s28  ;;  %p462_p5 = scmp.lt.u32.totalorder %s458_s28, %s697_s4 }
  0x4c   :  { %p464_p6 = pnand %p462_p5, %p459_p4 }
  0x4e   :  { %467 = shalt.err (!%p464_p6)
}
  0x4f   :  { %s468_s9 = scalar_lea.vmem %s67_s15, 16  ;;  %s472_s10 = scalar_lea.vmem %s67_s15, 32 }
  0x50   :  { %p469_p7 = scmp.ne.s32.totalorder %s67_s15, %s468_s9  ;;  %p473_p8 = scmp.lt.s32.totalorder %s67_s15, %s67_s15 }
  0x51   :  { %p474_p9 = scmp.lt.s32.totalorder %s472_s10, %s468_s9 }
  0x53   :  { %p475_p10 = por %p474_p9, %p473_p8 }
  0x55   :  { %p476_p11 = pnand %p475_p10, %p469_p7 }
  0x57   :  { %479 = shalt.err (!%p476_p11)
}
  0x58   :  { %69 = dma.hbm_to_vmem [thread:$0]  %s697_s4, 16, %s67_s15, [#allocation10]  }
  0x59   :  { %s543_s12 = smov [#allocation12]   ;;  %s480_s17 = scalar_lea.hbm %s698_s5, 16 }
  0x5a   :  { %s76_s13 = sshll.u32 %s543_s12, 4  ;;  %p481_p12 = scmp.ne.s32.totalorder %s698_s5, %s480_s17  ;;  %s77_s13 = int_to_ptr.vmem [resolvable:$true] %s76_s13 }
  0x5b   :  { %p484_p13 = scmp.lt.u32.totalorder %s480_s17, %s698_s5 }
  0x5d   :  { %p486_p0 = pnand %p484_p13, %p481_p12 }
  0x5f   :  { %489 = shalt.err (!%p486_p0)
}
  0x60   :  { %s490_s21 = scalar_lea.vmem %s77_s13, 16  ;;  %s494_s4 = scalar_lea.vmem %s77_s13, 32 }
  0x61   :  { %p491_p1 = scmp.ne.s32.totalorder %s77_s13, %s490_s21  ;;  %p495_p2 = scmp.lt.s32.totalorder %s77_s13, %s77_s13 }
  0x62   :  { %p496_p3 = scmp.lt.s32.totalorder %s494_s4, %s490_s21 }
  0x64   :  { %p497_p4 = por %p496_p3, %p495_p2 }
  0x66   :  { %p498_p5 = pnand %p497_p4, %p491_p1 }
  0x68   :  { %501 = shalt.err (!%p498_p5)
}
  0x69   :  { %79 = dma.hbm_to_vmem [thread:$0]  %s698_s5, 16, %s77_s13, [#allocation13]  }
  0x6a   :  { %524 = dma.done.wait [#allocation4], 256  }
  0x6b   :  { %525 = vsyncadd [#allocation4], 4294967040 }
  0x6c   :  { %526 = dma.done.wait [#allocation7], 32  }
  0x6d   :  { %527 = vsyncadd [#allocation7], 4294967264 }
  0x6e   :  { %528 = dma.done.wait [#allocation10], 1040  }
  0x6f   :  { %529 = vsyncadd [#allocation10], 4294966256 }
  0x70   :  { %530 = dma.done.wait [#allocation13], 16  }
  0x71   :  { %531 = vsyncadd [#allocation13], 4294967280  ;;  %v544_v0 = vmov 0.0   ;;  %v664_v1 = vld [vmem:[#allocation3] sm:$0xff]  ;;  %v666_v2 = vld [vmem:[#allocation3 + $0x8] sm:$0xff]  ;;  %vm545_vm0 = vmmov 0  }
  0x72   :  { %325 = vmatprep.subr.bf16.mxu0 %v544_v0  ;;  %105 = vadd.xlane.f32.xlu0 %v664_v1  ;;  %v109_v3 = vmul.f32 %v664_v1, %v664_v1  ;;  %v110_v4 = vmul.f32 %v666_v2, %v666_v2  ;;  %v358_v5 = vld [vmem:[#allocation9] sm:$0xff]   ;;  %v359_v6 = vld [vmem:[#allocation9 + $0x8] sm:$0xff]   ;;  %v360_v7 = vld [vmem:[#allocation9 + $0x10] sm:$0xff]   ;;  %s546_s5 = smov [#allocation14]  }
  0x73   :  { %326 = vmatpush3.bf16.msra.mxu0 %v358_v5  ;;  %v361_v8 = vld [vmem:[#allocation9 + $0x18] sm:$0xff]   ;;  %v362_v9 = vld [vmem:[#allocation9 + $0x20] sm:$0xff]   ;;  %341 = vmatprep.mubr.msk.bf16.mxu0 %vm545_vm0, %v544_v0  ;;  %v363_v10 = vld [vmem:[#allocation9 + $0x28] sm:$0xff]   ;;  %s288_s22 = sshll.u32 %s546_s5, 4  ;;  %s289_s22 = int_to_ptr.vmem [resolvable:$true] %s288_s22 }
  0x74   :  { %111 = vadd.xlane.f32.xlu1 %v109_v3  ;;  %327 = vmatprep.subr.bf16.mxu0 %v544_v0  ;;  %v364_v11 = vld [vmem:[#allocation9 + $0x30] sm:$0xff]   ;;  %v365_v12 = vld [vmem:[#allocation9 + $0x38] sm:$0xff]   ;;  %v306_v40 = vld [vmem:[#allocation11] ss:$0 sm:$0xff]  ;;  %s502_s23 = scalar_lea.vmem %s289_s22, 256  ;;  %p507_p7 = scmp.lt.s32.totalorder %s289_s22, %s289_s22 }
  0x75   :  { %v304_v30 = vld [vmem:[#allocation6] ss:$0 sm:$0xff]  ;;  %v305_v35 = vld [vmem:[#allocation8] ss:$0 sm:$0xff]  ;;  %v315_v42 = vld [vmem:[#allocation12] ss:$0 sm:$0xff]  ;;  %p503_p6 = scmp.ne.s32.totalorder %s289_s22, %s502_s23  ;;  %p508_p8 = scmp.lt.s32.totalorder %s502_s23, %s502_s23 }
  0x76   :  { %107 = vadd.xlane.f32.xlu0 %v666_v2 }
  0x77   :  { %328 = vmatpush3.bf16.msra.mxu0 %v359_v6  ;;  %p509_p9 = por %p508_p8, %p507_p7 }
  0x78   :  { %113 = vadd.xlane.f32.xlu1 %v110_v4  ;;  %329 = vmatprep.subr.bf16.mxu0 %v544_v0 }
  0x79   :  { %p510_p10 = pnand %p509_p9, %p503_p6 }
  0x7b   :  { %330 = vmatpush3.bf16.msra.mxu0 %v360_v7 }
  0x7c   :  { %331 = vmatprep.subr.bf16.mxu0 %v544_v0 }
  0x7f   :  { %332 = vmatpush3.bf16.msra.mxu0 %v361_v8 }
  0x80   :  { %333 = vmatprep.subr.bf16.mxu0 %v544_v0 }
  0x83   :  { %334 = vmatpush3.bf16.msra.mxu0 %v362_v9 }
  0x84   :  { %335 = vmatprep.subr.bf16.mxu0 %v544_v0 }
  0x87   :  { %336 = vmatpush3.bf16.msra.mxu0 %v363_v10 }
  0x88   :  { %337 = vmatprep.subr.bf16.mxu0 %v544_v0 }
  0x8b   :  { %338 = vmatpush3.bf16.msra.mxu0 %v364_v11 }
  0x8c   :  { %339 = vmatprep.subr.bf16.mxu0 %v544_v0 }
  0x8f   :  { %340 = vmatpush3.bf16.msra.mxu0 %v365_v12 }
  0xff   :  { %v106_v13 = vpop.xlane.xlu0 %105 }
 0x100   :  { %v115_v14 = vmul.f32 0.03125, %v106_v13 }
 0x101   :  { %v112_v15 = vpop.xlane.xlu1 %111 }
 0x102   :  { %v119_v16 = vmul.f32 %v115_v14, %v115_v14  ;;  %v117_v17 = vmul.f32 0.03125, %v112_v15  ;;  %v123_v27 = vsub.f32 %v664_v1, %v115_v14 }
 0x103   :  { %v108_v18 = vpop.xlane.xlu0 %107 }
 0x104   :  { %v121_v19 = vsub.f32 %v117_v17, %v119_v16  ;;  %v116_v20 = vmul.f32 0.03125, %v108_v18 }
 0x105   :  { %v114_v21 = vpop.xlane.xlu1 %113 }
 0x106   :  { %v125_v22 = vadd.f32 1e-05, %v121_v19  ;;  %v120_v23 = vmul.f32 %v116_v20, %v116_v20  ;;  %v118_v24 = vmul.f32 0.03125, %v114_v21  ;;  %v124_v31 = vsub.f32 %v666_v2, %v116_v20 }
 0x108   :  { %366 = vrsqrt.f32 %v125_v22  ;;  %v122_v25 = vsub.f32 %v118_v24, %v120_v23 }
 0x10a   :  { %v126_v26 = vadd.f32 1e-05, %v122_v25 }
 0x10c   :  { %368 = vrsqrt.f32 %v126_v26 }
 0x112   :  { %v367_v28 = vpop.eup %366 }
 0x113   :  { %v129_v29 = vmul.f32 %v367_v28, %v123_v27 }
 0x115   :  { %v138_v34 = vmul.f32 %v304_v30, %v129_v29 }
 0x116   :  { %v369_v32 = vpop.eup %368 }
 0x117   :  { %v130_v33 = vmul.f32 %v369_v32, %v124_v31  ;;  %v147_v37 = vadd.f32 %v305_v35, %v138_v34 }
 0x119   :  { %v139_v36 = vmul.f32 %v304_v30, %v130_v33 }
 0x11b   :  { %v148_v38 = vadd.f32 %v305_v35, %v139_v36 }
 0x11d   :  { %v149_v39 = vpack.c.bf16 %v148_v38, %v147_v37 }
 0x11f   :  { %342 = vmatmul.mubr.bf16.vlgmr.msra.gmra.mrb[0].mxu0 %v149_v39 }
 0x1f2   :  { %v257_v41 = vpop.f32.mrb[0].mxu0 }
 0x1f3   :  { %v258_v43 = vadd.f32 %v306_v40, %v257_v41  ;;  %v343_v44 = vpop.f32.mrb[1].mxu0 }
 0x1f4   :  { %v260_v45 = vpop.f32.mrb[2].mxu0 }
 0x1f5   :  { %v277_v46 = vmul.f32 %v315_v42, %v258_v43  ;;  %v261_v47 = vadd.f32 %v306_v40, %v260_v45  ;;  %v344_v48 = vpop.f32.mrb[3].mxu0 }
 0x1f7   :  { %v279_v49 = vadd.f32 %v277_v46, %v664_v1  ;;  %v278_v50 = vmul.f32 %v315_v42, %v261_v47 }
 0x1f9   :  { %281 = vst [vmem:[#allocation14] sm:$0xff] %v279_v49  ;;  %v280_v51 = vadd.f32 %v278_v50, %v666_v2 }
 0x1fb   :  { %282 = vst [vmem:[#allocation14 + $0x8] sm:$0xff] %v280_v51 }
 0x1fc   :  { %513 = shalt.err (!%p510_p10)
}
 0x1fd   :  { %s514_s27 = scalar_lea.hbm %s699_s6, 256 }
 0x1fe   :  { %p515_p11 = scmp.ne.s32.totalorder %s699_s6, %s514_s27  ;;  %p518_p12 = scmp.lt.u32.totalorder %s514_s27, %s699_s6 }
 0x200   :  { %p520_p13 = pnand %p518_p12, %p515_p11 }
 0x202   :  { %523 = shalt.err (!%p520_p13)
}
 0x203   :  { %294 = dma.vmem_to_hbm [thread:$0]  %s289_s22, 256, %s699_s6, [#allocation5], %s539_s3, %s539_s3, %s540_s24  }
 0x204   :  { %532 = dma.done.wait [#allocation5], 256  }
 0x205   :  { %533 = vsyncadd [#allocation5], 4294967040 }
 0x206   :  { %298 = vsyncpa [#allocation4], 1 }
 0x207   :  { %299 = vsyncpa [#allocation7], 1 }
 0x208   :  { %300 = vsyncpa [#allocation10], 1 }
 0x209   :  { %301 = vsyncpa [#allocation13], 1 }
 0x20a   :  { %302 = vsyncpa [#allocation5], 1 }

</bundles_post_ra>
